<compile_context>
chip_gen: v7x
topology: tpu7x:2x2x1
jax: 0.10.0
libtpu: 0.0.40
codegen_flags: <defaults>
</compile_context>

<pallas_src>
import functools

import jax
import jax.numpy as jnp
from jax import lax
from jax.experimental import pallas as pl
from jax.experimental.pallas import tpu as pltpu

# -------------------- deterministic "config" (cfg.*) ------------------------
NUM_CLASSES = 8
NEG_POS_RATIO = 3
BBOX_THRESH = 0.5
BBOX_NORMALIZE_MEANS = (0.0, 0.0, 0.0, 0.0)
BBOX_NORMALIZE_STDS = (0.1, 0.1, 0.2, 0.2)
_INV_STDS = tuple(1.0 / s for s in BBOX_NORMALIZE_STDS)


def _pick_tile_n(n, max_tile=2048):
    """Largest 128-aligned divisor of N up to max_tile (or full N)."""
    if n <= max_tile:
        return n
    for t in range(max_tile, 127, -128):
        if n % t == 0:
            return t
    return n


# ---------------------------- Pallas kernels --------------------------------
def _overlaps_match_kernel(nb_ref, priors_ref, gt_ref,
                           bto_ref, bti_ref, bpv_ref, bpi_ref, *, tile_n):
    """Fused IoU (faster-rcnn +1 convention) + matching reductions.

    priors_ref : (4, TN)      corner coords, priors on lanes
    gt_ref     : (1, K, 5)    per-image GT boxes (+ label)
    outputs    : best_truth_overlap (1,1,TN), best_truth_idx (1,1,TN) int32,
                 best_prior_overlap (1,K,1),  best_prior_idx (1,K,1) int32
    """
    b = pl.program_id(0)
    t = pl.program_id(1)

    p = priors_ref[...]                       # (4, TN)
    g = gt_ref[0]                             # (K, 5)
    k_rows = g.shape[0]

    px1, py1, px2, py2 = p[0:1, :], p[1:2, :], p[2:3, :], p[3:4, :]   # (1, TN)
    gx1, gy1, gx2, gy2 = g[:, 0:1], g[:, 1:2], g[:, 2:3], g[:, 3:4]   # (K, 1)

    pw = px2 - px1 + 1.0
    ph = py2 - py1 + 1.0
    gw = gx2 - gx1 + 1.0
    gh = gy2 - gy1 + 1.0
    parea = pw * ph                            # (1, TN)
    garea = gw * gh                            # (K, 1)

    iw = jnp.maximum(jnp.minimum(px2, gx2) - jnp.maximum(px1, gx1) + 1.0, 0.0)
    ih = jnp.maximum(jnp.minimum(py2, gy2) - jnp.maximum(py1, gy1) + 1.0, 0.0)
    inter = iw * ih                            # (K, TN)
    ua = parea + garea - inter
    ov = inter / ua                            # exact div: 0.5-threshold safety

    # mask padded GT rows via num_boxes (robust, no zero-box heuristic)
    nb = nb_ref[b]
    row_ids = lax.broadcasted_iota(jnp.int32, ov.shape, 0)
    ov = jnp.where(row_ids < nb, ov, 0.0)

    # --- best truth per prior: max / first-argmax over K (sublane reduce) ---
    bto = jnp.max(ov, axis=0, keepdims=True)                       # (1, TN)
    bti = jnp.min(jnp.where(ov == bto, row_ids, k_rows),
                  axis=0, keepdims=True)                           # (1, TN)
    bto_ref[0] = bto
    bti_ref[0] = bti.astype(jnp.int32)

    # --- best prior per GT: argmax over N (lane reduce), acc across N tiles --
    col_ids = lax.broadcasted_iota(jnp.int32, ov.shape, 1)
    cmax = jnp.max(ov, axis=1, keepdims=True)                      # (K, 1)
    cidx = jnp.min(jnp.where(ov == cmax, col_ids, tile_n),
                   axis=1, keepdims=True) + t * tile_n             # (K, 1)

    @pl.when(t == 0)
    def _():
        bpv_ref[0] = jnp.full((k_rows, 1), -1.0, jnp.float32)
        bpi_ref[0] = jnp.zeros((k_rows, 1), jnp.int32)

    better = cmax > bpv_ref[0]
    bpv_ref[0] = jnp.where(better, cmax, bpv_ref[0])
    bpi_ref[0] = jnp.where(better, cidx, bpi_ref[0]).astype(jnp.int32)


def _loss_kernel(prior_ref, loc_ref, match_ref, conf_ref, tgt_ref, pos_ref,
                 ce_ref, locsum_ref):
    """Per-prior CE (lane-dense, unmasked) + in-kernel masked SmoothL1 sum.

    prior_ref : (4, TN)      rows = [pcx, pcy, 1/pw, 1/ph]  (precomputed)
    loc_ref   : (1, 4, TN)   predicted deltas
    match_ref : (1, 4, TN)   matched GT corner boxes
    conf_ref  : (1, C, TN)   class logits (streamed from HBM exactly once)
    tgt_ref   : (1, 1, TN)   int32 target class
    pos_ref   : (1, 1, TN)   float positive mask
    ce_ref    : (1, 1, TN)   logsumexp - picked   (reused for mining & CE loss)
    locsum_ref: (1, 1, 1)    per-batch SmoothL1 sum (accumulated over N tiles)
    """
    t = pl.program_id(1)

    pe = prior_ref[...]                        # (4, TN)
    ld = loc_ref[0]                            # (4, TN)
    m = match_ref[0]                           # (4, TN)
    pos = pos_ref[0]                           # (1, TN)

    pcx, pcy, ipw, iph = pe[0:1, :], pe[1:2, :], pe[2:3, :], pe[3:4, :]
    gw = m[2:3, :] - m[0:1, :] + 1.0
    gh = m[3:4, :] - m[1:2, :] + 1.0
    gcx = m[0:1, :] + 0.5 * gw
    gcy = m[1:2, :] + 0.5 * gh

    mn, istd = BBOX_NORMALIZE_MEANS, _INV_STDS
    tx = ((gcx - pcx) * ipw - mn[0]) * istd[0]
    ty = ((gcy - pcy) * iph - mn[1]) * istd[1]
    tw = (jnp.log(gw * ipw) - mn[2]) * istd[2]
    th = (jnp.log(gh * iph) - mn[3]) * istd[3]

    def sml1(d):
        ad = jnp.abs(d)
        return jnp.where(ad < 1.0, 0.5 * d * d, ad - 0.5)

    lsum = (sml1(ld[0:1, :] - tx) + sml1(ld[1:2, :] - ty)
            + sml1(ld[2:3, :] - tw) + sml1(ld[3:4, :] - th))       # (1, TN)
    part = jnp.sum(lsum * pos, axis=1, keepdims=True)              # (1, 1)

    @pl.when(t == 0)
    def _():
        locsum_ref[0] = jnp.zeros((1, 1), jnp.float32)
    locsum_ref[0] = locsum_ref[0] + part

    # per-prior cross-entropy (per-row stabilized; identical to global-max LSE)
    x = conf_ref[0]                            # (C, TN)
    tgt = tgt_ref[0]                           # (1, TN) int32
    rmax = jnp.max(x, axis=0, keepdims=True)
    lse = jnp.log(jnp.sum(jnp.exp(x - rmax), axis=0, keepdims=True)) + rmax
    cls_ids = lax.broadcasted_iota(jnp.int32, x.shape, 0)
    picked = jnp.sum(jnp.where(cls_ids == tgt, x, 0.0), axis=0, keepdims=True)
    ce_ref[0] = lse - picked


# -------------------------- Pallas call wrappers -----------------------------
def overlaps_match_pallas(priors_t, gt_bboxes, num_boxes, tile_n):
    _, N = priors_t.shape
    B, K, _ = gt_bboxes.shape
    NT = N // tile_n
    grid_spec = pltpu.PrefetchScalarGridSpec(
        num_scalar_prefetch=1,
        grid=(B, NT),
        in_specs=[
            pl.BlockSpec((4, tile_n), lambda b, t, nb: (0, t)),
            pl.BlockSpec((1, K, 5), lambda b, t, nb: (b, 0, 0)),
        ],
        out_specs=[
            pl.BlockSpec((1, 1, tile_n), lambda b, t, nb: (b, 0, t)),
            pl.BlockSpec((1, 1, tile_n), lambda b, t, nb: (b, 0, t)),
            pl.BlockSpec((1, K, 1), lambda b, t, nb: (b, 0, 0)),
            pl.BlockSpec((1, K, 1), lambda b, t, nb: (b, 0, 0)),
        ],
    )
    return pl.pallas_call(
        functools.partial(_overlaps_match_kernel, tile_n=tile_n),
        grid_spec=grid_spec,
        out_shape=(jax.ShapeDtypeStruct((B, 1, N), jnp.float32),
                   jax.ShapeDtypeStruct((B, 1, N), jnp.int32),
                   jax.ShapeDtypeStruct((B, K, 1), jnp.float32),
                   jax.ShapeDtypeStruct((B, K, 1), jnp.int32)),
        compiler_params=pltpu.CompilerParams(
            dimension_semantics=("parallel", "arbitrary")),
    )(num_boxes, priors_t, gt_bboxes)


def ssd_loss_pallas(prior_enc, loc_t, match_t, conf_t_data, tgt3, pos3, tile_n):
    B, C, N = conf_t_data.shape
    NT = N // tile_n
    return pl.pallas_call(
        _loss_kernel,
        out_shape=(jax.ShapeDtypeStruct((B, 1, N), jnp.float32),
                   jax.ShapeDtypeStruct((B, 1, 1), jnp.float32)),
        grid=(B, NT),
        in_specs=[
            pl.BlockSpec((4, tile_n), lambda b, t: (0, t)),
            pl.BlockSpec((1, 4, tile_n), lambda b, t: (b, 0, t)),
            pl.BlockSpec((1, 4, tile_n), lambda b, t: (b, 0, t)),
            pl.BlockSpec((1, C, tile_n), lambda b, t: (b, 0, t)),
            pl.BlockSpec((1, 1, tile_n), lambda b, t: (b, 0, t)),
            pl.BlockSpec((1, 1, tile_n), lambda b, t: (b, 0, t)),
        ],
        out_specs=[
            pl.BlockSpec((1, 1, tile_n), lambda b, t: (b, 0, t)),
            pl.BlockSpec((1, 1, 1), lambda b, t: (b, 0, 0)),
        ],
        compiler_params=pltpu.CompilerParams(
            dimension_semantics=("parallel", "arbitrary")),
    )(prior_enc, loc_t, match_t, conf_t_data, tgt3, pos3)


# ----------------------------- forward pass ----------------------------------
def multibox_loss(loc_data, conf_data, priors, gt_bboxes, num_boxes):
    B, N, C = conf_data.shape
    K = gt_bboxes.shape[1]
    priors = priors[:N, :]
    tile_n = _pick_tile_n(N)

    # ---- layout plumbing (cheap): priors-on-lanes ----
    priors_t = priors.T                                      # (4, N)
    pw = priors[:, 2] - priors[:, 0] + 1.0
    ph = priors[:, 3] - priors[:, 1] + 1.0
    prior_enc = jnp.stack([priors[:, 0] + 0.5 * pw,          # pcx
                           priors[:, 1] + 0.5 * ph,          # pcy
                           1.0 / pw, 1.0 / ph], axis=0)      # (4, N)
    loc_t = jnp.swapaxes(loc_data, 1, 2)                     # (B, 4, N)
    conf_t_data = jnp.swapaxes(conf_data, 1, 2)              # (B, C, N)

    # 1) fused IoU + matching reductions (Pallas); (B,N,K) never hits HBM
    bto3, bti3, _bpv, bpi3 = overlaps_match_pallas(
        priors_t, gt_bboxes, num_boxes.astype(jnp.int32), tile_n)
    bto = bto3[:, 0, :]                                      # (B, N)
    bti = bti3[:, 0, :]                                      # (B, N) int32
    bpi = bpi3[:, :, 0]                                      # (B, K) int32

    # 2) force-matching scatter + GT gather (data-dependent; plain JAX glue)
    def match_one(bp_idx, bto_b, bti_b, gt_b, nb):
        def body(j, carry):
            bto_c, bti_c = carry
            pi = bp_idx[j]
            valid = j < nb
            bto_c = jnp.where(valid, bto_c.at[pi].set(2.0), bto_c)
            bti_c = jnp.where(valid, bti_c.at[pi].set(j), bti_c)
            return bto_c, bti_c
        bto_b, bti_b = lax.fori_loop(0, K, body, (bto_b, bti_b))
        matches = gt_b[bti_b]                                # (N, 5)
        conf = jnp.where(bto_b < BBOX_THRESH, 0.0, matches[:, 4])
        return matches[:, :4].T, conf                        # (4, N), (N,)

    match_t, conf_f = jax.vmap(match_one)(bpi, bto, bti, gt_bboxes, num_boxes)
    conf_tgt = conf_f.astype(jnp.int32)                      # (B, N)
    pos = conf_tgt > 0
    tgt3 = conf_tgt[:, None, :]                              # (B, 1, N) int32
    pos3 = pos[:, None, :].astype(jnp.float32)               # (B, 1, N)

    # 3) one pass over conf_data: per-prior CE + masked SmoothL1 sum (Pallas)
    ce3, loc_sum = ssd_loss_pallas(prior_enc, loc_t, match_t, conf_t_data,
                                   tgt3, pos3, tile_n)
    ce = ce3[:, 0, :]                                        # (B, N)

    # 4) hard-negative mining (data-dependent ranking; plain JAX glue)
    # TODO(synk): double argsort for rank computation has no clean Pallas
    # equivalent on TPU; kept as plain-JAX glue.
    loss_c_mine = jnp.where(pos, 0.0, ce)
    loss_idx = jnp.argsort(-loss_c_mine, axis=1)
    idx_rank = jnp.argsort(loss_idx, axis=1)
    num_pos = jnp.sum(pos.astype(jnp.int32), axis=1, keepdims=True)
    num_neg = jnp.minimum(NEG_POS_RATIO * num_pos, N - 1)
    neg = idx_rank < num_neg
    posneg = jnp.logical_or(pos, neg).astype(jnp.float32)    # (B, N)

    # 5) normalize (zero-positive guard); conf sum over tiny (B,N) left to XLA
    n_match = jnp.maximum(jnp.sum(num_pos).astype(jnp.float32), 1.0)
    loss_l = jnp.sum(loc_sum) / n_match
    loss_c = jnp.sum(ce * posneg) / n_match
    return loss_l, loss_c


# --------------------------------- main --------------------------------------
if __name__ == "__main__":
    key = jax.random.PRNGKey(0)
    k1, k2 = jax.random.split(key)

    B, N, C, K = 2, 64, NUM_CLASSES, 8

    # priors: an 8x8 grid of 24x24 boxes (stride 16) in corner form (x1,y1,x2,y2)
    xs = jnp.arange(8, dtype=jnp.float32) * 16.0
    gx, gy = jnp.meshgrid(xs, xs, indexing="ij")
    gx = gx.reshape(-1)
    gy = gy.reshape(-1)
    priors = jnp.stack([gx, gy, gx + 23.0, gy + 23.0], axis=1)   # (64, 4)

    # ground-truth boxes: [x1, y1, x2, y2, label], zero-padded rows
    num_boxes = jnp.array([3, 2], dtype=jnp.int32)
    gt_bboxes = jnp.zeros((B, K, 5), jnp.float32)
    gt_bboxes = gt_bboxes.at[0, 0].set(jnp.array([16., 16., 39., 39., 3.]))
    gt_bboxes = gt_bboxes.at[0, 1].set(jnp.array([64., 32., 87., 55., 5.]))
    gt_bboxes = gt_bboxes.at[0, 2].set(jnp.array([96., 96., 119., 119., 1.]))
    gt_bboxes = gt_bboxes.at[1, 0].set(jnp.array([0., 0., 23., 23., 2.]))
    gt_bboxes = gt_bboxes.at[1, 1].set(jnp.array([48., 80., 71., 103., 6.]))

    loc_data = 0.1 * jax.random.normal(k1, (B, N, 4), jnp.float32)
    conf_data = jax.random.normal(k2, (B, N, C), jnp.float32)

    loss_l, loss_c = jax.jit(multibox_loss)(loc_data, conf_data, priors,
                                            gt_bboxes, num_boxes)
    jax.block_until_ready((loss_l, loss_c))
    assert jnp.isfinite(loss_l) and jnp.isfinite(loss_c)
    print("KERNEL_OK")
</pallas_src>

<mosaic_0001>
module attributes {stable_mosaic.version = 11 : i64} {
  func.func @_overlaps_match_kernel(%arg0: i32, %arg1: i32, %arg2: memref<2xi32, #tpu.memory_space<smem>>, %arg3: memref<4x64xf32, #tpu.memory_space<vmem>>, %arg4: memref<1x8x5xf32, #tpu.memory_space<vmem>>, %arg5: memref<1x1x64xf32, #tpu.memory_space<vmem>>, %arg6: memref<1x1x64xi32, #tpu.memory_space<vmem>>, %arg7: memref<1x8x1xf32, #tpu.memory_space<vmem>>, %arg8: memref<1x8x1xi32, #tpu.memory_space<vmem>>) attributes {dimension_semantics = [#tpu.dimension_semantics<parallel>, #tpu.dimension_semantics<arbitrary>], iteration_bounds = array<i64: 2, 1>, scalar_prefetch = 1 : i64, scratch_operands = 0 : i64, tpu.core_type = #tpu.core_type<tc>, window_params = [{transform_indices = @transform_0, window_bounds = array<i64: 4, 64>}, {transform_indices = @transform_1, window_bounds = array<i64: 1, 8, 5>}, {transform_indices = @transform_2, window_bounds = array<i64: 1, 1, 64>}, {transform_indices = @transform_3, window_bounds = array<i64: 1, 1, 64>}, {transform_indices = @transform_4, window_bounds = array<i64: 1, 8, 1>}, {transform_indices = @transform_5, window_bounds = array<i64: 1, 8, 1>}]} {
    %c0 = arith.constant 0 : index
    %c0_0 = arith.constant 0 : index
    %0 = vector.load %arg3[%c0, %c0_0] : memref<4x64xf32, #tpu.memory_space<vmem>>, vector<4x64xf32>
    %c0_1 = arith.constant 0 : index
    %c0_2 = arith.constant 0 : index
    %c0_3 = arith.constant 0 : index
    %1 = vector.load %arg4[%c0_1, %c0_2, %c0_3] : memref<1x8x5xf32, #tpu.memory_space<vmem>>, vector<1x8x5xf32>
    %2 = vector.shape_cast %1 : vector<1x8x5xf32> to vector<8x5xf32>
    %3 = vector.extract_strided_slice %0 {offsets = [0, 0], sizes = [1, 64], strides = [1, 1]} : vector<4x64xf32> to vector<1x64xf32>
    %4 = vector.extract_strided_slice %0 {offsets = [1, 0], sizes = [1, 64], strides = [1, 1]} : vector<4x64xf32> to vector<1x64xf32>
    %5 = vector.extract_strided_slice %0 {offsets = [2, 0], sizes = [1, 64], strides = [1, 1]} : vector<4x64xf32> to vector<1x64xf32>
    %6 = vector.extract_strided_slice %0 {offsets = [3, 0], sizes = [1, 64], strides = [1, 1]} : vector<4x64xf32> to vector<1x64xf32>
    %7 = vector.extract_strided_slice %2 {offsets = [0, 0], sizes = [8, 1], strides = [1, 1]} : vector<8x5xf32> to vector<8x1xf32>
    %8 = vector.extract_strided_slice %2 {offsets = [0, 1], sizes = [8, 1], strides = [1, 1]} : vector<8x5xf32> to vector<8x1xf32>
    %9 = vector.extract_strided_slice %2 {offsets = [0, 2], sizes = [8, 1], strides = [1, 1]} : vector<8x5xf32> to vector<8x1xf32>
    %10 = vector.extract_strided_slice %2 {offsets = [0, 3], sizes = [8, 1], strides = [1, 1]} : vector<8x5xf32> to vector<8x1xf32>
    %11 = arith.subf %5, %3 : vector<1x64xf32>
    %cst = arith.constant 1.000000e+00 : f32
    %12 = vector.broadcast %cst : f32 to vector<1x64xf32>
    %13 = arith.addf %11, %12 : vector<1x64xf32>
    %14 = arith.subf %6, %4 : vector<1x64xf32>
    %cst_4 = arith.constant 1.000000e+00 : f32
    %15 = vector.broadcast %cst_4 : f32 to vector<1x64xf32>
    %16 = arith.addf %14, %15 : vector<1x64xf32>
    %17 = arith.subf %9, %7 : vector<8x1xf32>
    %cst_5 = arith.constant 1.000000e+00 : f32
    %18 = vector.broadcast %cst_5 : f32 to vector<8x1xf32>
    %19 = arith.addf %17, %18 : vector<8x1xf32>
    %20 = arith.subf %10, %8 : vector<8x1xf32>
    %cst_6 = arith.constant 1.000000e+00 : f32
    %21 = vector.broadcast %cst_6 : f32 to vector<8x1xf32>
    %22 = arith.addf %20, %21 : vector<8x1xf32>
    %23 = arith.mulf %13, %16 : vector<1x64xf32>
    %24 = arith.mulf %19, %22 : vector<8x1xf32>
    %25 = vector.broadcast %5 : vector<1x64xf32> to vector<8x64xf32>
    %26 = vector.broadcast %9 : vector<8x1xf32> to vector<8x64xf32>
    %27 = arith.minimumf %25, %26 : vector<8x64xf32>
    %28 = vector.broadcast %3 : vector<1x64xf32> to vector<8x64xf32>
    %29 = vector.broadcast %7 : vector<8x1xf32> to vector<8x64xf32>
    %30 = arith.maximumf %28, %29 : vector<8x64xf32>
    %31 = arith.subf %27, %30 : vector<8x64xf32>
    %cst_7 = arith.constant 1.000000e+00 : f32
    %32 = vector.broadcast %cst_7 : f32 to vector<8x64xf32>
    %33 = arith.addf %31, %32 : vector<8x64xf32>
    %cst_8 = arith.constant 0.000000e+00 : f32
    %34 = vector.broadcast %cst_8 : f32 to vector<8x64xf32>
    %35 = arith.maximumf %33, %34 : vector<8x64xf32>
    %36 = vector.broadcast %6 : vector<1x64xf32> to vector<8x64xf32>
    %37 = vector.broadcast %10 : vector<8x1xf32> to vector<8x64xf32>
    %38 = arith.minimumf %36, %37 : vector<8x64xf32>
    %39 = vector.broadcast %4 : vector<1x64xf32> to vector<8x64xf32>
    %40 = vector.broadcast %8 : vector<8x1xf32> to vector<8x64xf32>
    %41 = arith.maximumf %39, %40 : vector<8x64xf32>
    %42 = arith.subf %38, %41 : vector<8x64xf32>
    %cst_9 = arith.constant 1.000000e+00 : f32
    %43 = vector.broadcast %cst_9 : f32 to vector<8x64xf32>
    %44 = arith.addf %42, %43 : vector<8x64xf32>
    %cst_10 = arith.constant 0.000000e+00 : f32
    %45 = vector.broadcast %cst_10 : f32 to vector<8x64xf32>
    %46 = arith.maximumf %44, %45 : vector<8x64xf32>
    %47 = arith.mulf %35, %46 : vector<8x64xf32>
    %48 = vector.broadcast %23 : vector<1x64xf32> to vector<8x64xf32>
    %49 = vector.broadcast %24 : vector<8x1xf32> to vector<8x64xf32>
    %50 = arith.addf %48, %49 : vector<8x64xf32>
    %51 = arith.subf %50, %47 : vector<8x64xf32>
    %52 = arith.divf %47, %51 : vector<8x64xf32>
    %53 = arith.index_cast %arg0 : i32 to index
    %54 = memref.load %arg2[%53] : memref<2xi32, #tpu.memory_space<smem>>
    %55 = tpu.iota {dimensions = array<i32: 0>} : vector<8x64xi32>
    %56 = vector.broadcast %54 : i32 to vector<8x64xi32>
    %57 = arith.cmpi slt, %55, %56 : vector<8x64xi32>
    %cst_11 = arith.constant 0.000000e+00 : f32
    %58 = vector.broadcast %cst_11 : f32 to vector<8x64xf32>
    %59 = arith.select %57, %52, %58 : vector<8x64xi1>, vector<8x64xf32>
    %cst_12 = arith.constant dense<0xFF800000> : vector<64xf32>
    %60 = vector.multi_reduction <maximumf>, %59, %cst_12 [0] : vector<8x64xf32> to vector<64xf32>
    %61 = vector.shape_cast %60 : vector<64xf32> to vector<1x64xf32>
    %62 = vector.broadcast %61 : vector<1x64xf32> to vector<8x64xf32>
    %63 = arith.cmpf oeq, %59, %62 : vector<8x64xf32>
    %c8_i32 = arith.constant 8 : i32
    %64 = vector.broadcast %c8_i32 : i32 to vector<8x64xi32>
    %65 = arith.select %63, %55, %64 : vector<8x64xi1>, vector<8x64xi32>
    %cst_13 = arith.constant dense<2147483647> : vector<64xi32>
    %66 = vector.multi_reduction <minsi>, %65, %cst_13 [0] : vector<8x64xi32> to vector<64xi32>
    %67 = vector.shape_cast %66 : vector<64xi32> to vector<1x64xi32>
    %c0_14 = arith.constant 0 : index
    %c0_15 = arith.constant 0 : index
    %c0_16 = arith.constant 0 : index
    %68 = vector.load %arg5[%c0_14, %c0_15, %c0_16] : memref<1x1x64xf32, #tpu.memory_space<vmem>>, vector<1x1x64xf32>
    %69 = vector.shape_cast %68 : vector<1x1x64xf32> to vector<1x64xf32>
    %70 = vector.shape_cast %61 : vector<1x64xf32> to vector<1x1x64xf32>
    tpu.vector_store %arg5[%c0_14, %c0_15, %c0_16], %70 {strides = array<i32>} : memref<1x1x64xf32, #tpu.memory_space<vmem>>, vector<1x1x64xf32>,
    %c0_17 = arith.constant 0 : index
    %c0_18 = arith.constant 0 : index
    %c0_19 = arith.constant 0 : index
    %71 = vector.load %arg6[%c0_17, %c0_18, %c0_19] : memref<1x1x64xi32, #tpu.memory_space<vmem>>, vector<1x1x64xi32>
    %72 = vector.shape_cast %71 : vector<1x1x64xi32> to vector<1x64xi32>
    %73 = vector.shape_cast %67 : vector<1x64xi32> to vector<1x1x64xi32>
    tpu.vector_store %arg6[%c0_17, %c0_18, %c0_19], %73 {strides = array<i32>} : memref<1x1x64xi32, #tpu.memory_space<vmem>>, vector<1x1x64xi32>,
    %74 = tpu.iota {dimensions = array<i32: 1>} : vector<8x64xi32>
    %cst_20 = arith.constant dense<0xFF800000> : vector<8xf32>
    %75 = vector.multi_reduction <maximumf>, %59, %cst_20 [1] : vector<8x64xf32> to vector<8xf32>
    %76 = vector.shape_cast %75 : vector<8xf32> to vector<8x1xf32>
    %77 = vector.broadcast %76 : vector<8x1xf32> to vector<8x64xf32>
    %78 = arith.cmpf oeq, %59, %77 : vector<8x64xf32>
    %c64_i32 = arith.constant 64 : i32
    %79 = vector.broadcast %c64_i32 : i32 to vector<8x64xi32>
    %80 = arith.select %78, %74, %79 : vector<8x64xi1>, vector<8x64xi32>
    %cst_21 = arith.constant dense<2147483647> : vector<8xi32>
    %81 = vector.multi_reduction <minsi>, %80, %cst_21 [1] : vector<8x64xi32> to vector<8xi32>
    %82 = vector.shape_cast %81 : vector<8xi32> to vector<8x1xi32>
    %c64_i32_22 = arith.constant 64 : i32
    %83 = arith.muli %arg1, %c64_i32_22 : i32
    %84 = vector.broadcast %83 : i32 to vector<8x1xi32>
    %85 = arith.addi %82, %84 : vector<8x1xi32>
    %c0_i32 = arith.constant 0 : i32
    %86 = arith.cmpi eq, %arg1, %c0_i32 : i32
    %87 = arith.extui %86 : i1 to i32
    %c0_i32_23 = arith.constant 0 : i32
    %88 = arith.cmpi ne, %87, %c0_i32_23 : i32
    scf.if %88 {
      %cst_39 = arith.constant -1.000000e+00 : f32
      %104 = vector.broadcast %cst_39 : f32 to vector<8x1xf32>
      %c0_40 = arith.constant 0 : index
      %c0_41 = arith.constant 0 : index
      %c0_42 = arith.constant 0 : index
      %105 = vector.load %arg7[%c0_40, %c0_41, %c0_42] : memref<1x8x1xf32, #tpu.memory_space<vmem>>, vector<1x8x1xf32>
      %106 = vector.shape_cast %105 : vector<1x8x1xf32> to vector<8x1xf32>
      %107 = vector.shape_cast %104 : vector<8x1xf32> to vector<1x8x1xf32>
      tpu.vector_store %arg7[%c0_40, %c0_41, %c0_42], %107 {strides = array<i32>} : memref<1x8x1xf32, #tpu.memory_space<vmem>>, vector<1x8x1xf32>,
      %c0_i32_43 = arith.constant 0 : i32
      %108 = vector.broadcast %c0_i32_43 : i32 to vector<8x1xi32>
      %c0_44 = arith.constant 0 : index
      %c0_45 = arith.constant 0 : index
      %c0_46 = arith.constant 0 : index
      %109 = vector.load %arg8[%c0_44, %c0_45, %c0_46] : memref<1x8x1xi32, #tpu.memory_space<vmem>>, vector<1x8x1xi32>
      %110 = vector.shape_cast %109 : vector<1x8x1xi32> to vector<8x1xi32>
      %111 = vector.shape_cast %108 : vector<8x1xi32> to vector<1x8x1xi32>
      tpu.vector_store %arg8[%c0_44, %c0_45, %c0_46], %111 {strides = array<i32>} : memref<1x8x1xi32, #tpu.memory_space<vmem>>, vector<1x8x1xi32>,
    } else {
    }
    %c0_24 = arith.constant 0 : index
    %c0_25 = arith.constant 0 : index
    %c0_26 = arith.constant 0 : index
    %89 = vector.load %arg7[%c0_24, %c0_25, %c0_26] : memref<1x8x1xf32, #tpu.memory_space<vmem>>, vector<1x8x1xf32>
    %90 = vector.shape_cast %89 : vector<1x8x1xf32> to vector<8x1xf32>
    %91 = arith.cmpf ogt, %76, %90 : vector<8x1xf32>
    %c0_27 = arith.constant 0 : index
    %c0_28 = arith.constant 0 : index
    %c0_29 = arith.constant 0 : index
    %92 = vector.load %arg7[%c0_27, %c0_28, %c0_29] : memref<1x8x1xf32, #tpu.memory_space<vmem>>, vector<1x8x1xf32>
    %93 = vector.shape_cast %92 : vector<1x8x1xf32> to vector<8x1xf32>
    %94 = arith.select %91, %76, %93 : vector<8x1xi1>, vector<8x1xf32>
    %c0_30 = arith.constant 0 : index
    %c0_31 = arith.constant 0 : index
    %c0_32 = arith.constant 0 : index
    %95 = vector.load %arg7[%c0_30, %c0_31, %c0_32] : memref<1x8x1xf32, #tpu.memory_space<vmem>>, vector<1x8x1xf32>
    %96 = vector.shape_cast %95 : vector<1x8x1xf32> to vector<8x1xf32>
    %97 = vector.shape_cast %94 : vector<8x1xf32> to vector<1x8x1xf32>
    tpu.vector_store %arg7[%c0_30, %c0_31, %c0_32], %97 {strides = array<i32>} : memref<1x8x1xf32, #tpu.memory_space<vmem>>, vector<1x8x1xf32>,
    %c0_33 = arith.constant 0 : index
    %c0_34 = arith.constant 0 : index
    %c0_35 = arith.constant 0 : index
    %98 = vector.load %arg8[%c0_33, %c0_34, %c0_35] : memref<1x8x1xi32, #tpu.memory_space<vmem>>, vector<1x8x1xi32>
    %99 = vector.shape_cast %98 : vector<1x8x1xi32> to vector<8x1xi32>
    %100 = arith.select %91, %85, %99 : vector<8x1xi1>, vector<8x1xi32>
    %c0_36 = arith.constant 0 : index
    %c0_37 = arith.constant 0 : index
    %c0_38 = arith.constant 0 : index
    %101 = vector.load %arg8[%c0_36, %c0_37, %c0_38] : memref<1x8x1xi32, #tpu.memory_space<vmem>>, vector<1x8x1xi32>
    %102 = vector.shape_cast %101 : vector<1x8x1xi32> to vector<8x1xi32>
    %103 = vector.shape_cast %100 : vector<8x1xi32> to vector<1x8x1xi32>
    tpu.vector_store %arg8[%c0_36, %c0_37, %c0_38], %103 {strides = array<i32>} : memref<1x8x1xi32, #tpu.memory_space<vmem>>, vector<1x8x1xi32>,
    return
  }
  func.func @transform_0(%arg0: i32, %arg1: i32, %arg2: memref<2xi32, #tpu.memory_space<smem>>) -> (i32, i32) {
    %c0_i32 = arith.constant 0 : i32
    %c0_i32_0 = arith.constant 0 : i32
    return %c0_i32, %arg1 : i32, i32
  }
  func.func @transform_1(%arg0: i32, %arg1: i32, %arg2: memref<2xi32, #tpu.memory_space<smem>>) -> (i32, i32, i32) {
    %c0_i32 = arith.constant 0 : i32
    %c0_i32_0 = arith.constant 0 : i32
    %c0_i32_1 = arith.constant 0 : i32
    return %arg0, %c0_i32, %c0_i32_0 : i32, i32, i32
  }
  func.func @transform_2(%arg0: i32, %arg1: i32, %arg2: memref<2xi32, #tpu.memory_space<smem>>) -> (i32, i32, i32) {
    %c0_i32 = arith.constant 0 : i32
    %c0_i32_0 = arith.constant 0 : i32
    return %arg0, %c0_i32, %arg1 : i32, i32, i32
  }
  func.func @transform_3(%arg0: i32, %arg1: i32, %arg2: memref<2xi32, #tpu.memory_space<smem>>) -> (i32, i32, i32) {
    %c0_i32 = arith.constant 0 : i32
    %c0_i32_0 = arith.constant 0 : i32
    return %arg0, %c0_i32, %arg1 : i32, i32, i32
  }
  func.func @transform_4(%arg0: i32, %arg1: i32, %arg2: memref<2xi32, #tpu.memory_space<smem>>) -> (i32, i32, i32) {
    %c0_i32 = arith.constant 0 : i32
    %c0_i32_0 = arith.constant 0 : i32
    %c0_i32_1 = arith.constant 0 : i32
    return %arg0, %c0_i32, %c0_i32_0 : i32, i32, i32
  }
  func.func @transform_5(%arg0: i32, %arg1: i32, %arg2: memref<2xi32, #tpu.memory_space<smem>>) -> (i32, i32, i32) {
    %c0_i32 = arith.constant 0 : i32
    %c0_i32_0 = arith.constant 0 : i32
    %c0_i32_1 = arith.constant 0 : i32
    return %arg0, %c0_i32, %c0_i32_0 : i32, i32, i32
  }
}

module attributes {stable_mosaic.version = 11 : i64} {
  func.func @_loss_kernel(%arg0: i32, %arg1: i32, %arg2: memref<4x64xf32, #tpu.memory_space<vmem>>, %arg3: memref<1x4x64xf32, #tpu.memory_space<vmem>>, %arg4: memref<1x4x64xf32, #tpu.memory_space<vmem>>, %arg5: memref<1x8x64xf32, #tpu.memory_space<vmem>>, %arg6: memref<1x1x64xi32, #tpu.memory_space<vmem>>, %arg7: memref<1x1x64xf32, #tpu.memory_space<vmem>>, %arg8: memref<1x1x64xf32, #tpu.memory_space<vmem>>, %arg9: memref<1x1x1xf32, #tpu.memory_space<vmem>>) attributes {dimension_semantics = [#tpu.dimension_semantics<parallel>, #tpu.dimension_semantics<arbitrary>], iteration_bounds = array<i64: 2, 1>, scalar_prefetch = 0 : i64, scratch_operands = 0 : i64, tpu.core_type = #tpu.core_type<tc>, window_params = [{transform_indices = @transform_0, window_bounds = array<i64: 4, 64>}, {transform_indices = @transform_1, window_bounds = array<i64: 1, 4, 64>}, {transform_indices = @transform_2, window_bounds = array<i64: 1, 4, 64>}, {transform_indices = @transform_3, window_bounds = array<i64: 1, 8, 64>}, {transform_indices = @transform_4, window_bounds = array<i64: 1, 1, 64>}, {transform_indices = @transform_5, window_bounds = array<i64: 1, 1, 64>}, {transform_indices = @transform_6, window_bounds = array<i64: 1, 1, 64>}, {transform_indices = @transform_7, window_bounds = array<i64: 1, 1, 1>}]} {
    %c0 = arith.constant 0 : index
    %c0_0 = arith.constant 0 : index
    %0 = vector.load %arg2[%c0, %c0_0] : memref<4x64xf32, #tpu.memory_space<vmem>>, vector<4x64xf32>
    %c0_1 = arith.constant 0 : index
    %c0_2 = arith.constant 0 : index
    %c0_3 = arith.constant 0 : index
    %1 = vector.load %arg3[%c0_1, %c0_2, %c0_3] : memref<1x4x64xf32, #tpu.memory_space<vmem>>, vector<1x4x64xf32>
    %2 = vector.shape_cast %1 : vector<1x4x64xf32> to vector<4x64xf32>
    %c0_4 = arith.constant 0 : index
    %c0_5 = arith.constant 0 : index
    %c0_6 = arith.constant 0 : index
    %3 = vector.load %arg4[%c0_4, %c0_5, %c0_6] : memref<1x4x64xf32, #tpu.memory_space<vmem>>, vector<1x4x64xf32>
    %4 = vector.shape_cast %3 : vector<1x4x64xf32> to vector<4x64xf32>
    %c0_7 = arith.constant 0 : index
    %c0_8 = arith.constant 0 : index
    %c0_9 = arith.constant 0 : index
    %5 = vector.load %arg7[%c0_7, %c0_8, %c0_9] : memref<1x1x64xf32, #tpu.memory_space<vmem>>, vector<1x1x64xf32>
    %6 = vector.shape_cast %5 : vector<1x1x64xf32> to vector<1x64xf32>
    %7 = vector.extract_strided_slice %0 {offsets = [0, 0], sizes = [1, 64], strides = [1, 1]} : vector<4x64xf32> to vector<1x64xf32>
    %8 = vector.extract_strided_slice %0 {offsets = [1, 0], sizes = [1, 64], strides = [1, 1]} : vector<4x64xf32> to vector<1x64xf32>
    %9 = vector.extract_strided_slice %0 {offsets = [2, 0], sizes = [1, 64], strides = [1, 1]} : vector<4x64xf32> to vector<1x64xf32>
    %10 = vector.extract_strided_slice %0 {offsets = [3, 0], sizes = [1, 64], strides = [1, 1]} : vector<4x64xf32> to vector<1x64xf32>
    %11 = vector.extract_strided_slice %4 {offsets = [2, 0], sizes = [1, 64], strides = [1, 1]} : vector<4x64xf32> to vector<1x64xf32>
    %12 = vector.extract_strided_slice %4 {offsets = [0, 0], sizes = [1, 64], strides = [1, 1]} : vector<4x64xf32> to vector<1x64xf32>
    %13 = arith.subf %11, %12 : vector<1x64xf32>
    %cst = arith.constant 1.000000e+00 : f32
    %14 = vector.broadcast %cst : f32 to vector<1x64xf32>
    %15 = arith.addf %13, %14 : vector<1x64xf32>
    %16 = vector.extract_strided_slice %4 {offsets = [3, 0], sizes = [1, 64], strides = [1, 1]} : vector<4x64xf32> to vector<1x64xf32>
    %17 = vector.extract_strided_slice %4 {offsets = [1, 0], sizes = [1, 64], strides = [1, 1]} : vector<4x64xf32> to vector<1x64xf32>
    %18 = arith.subf %16, %17 : vector<1x64xf32>
    %cst_10 = arith.constant 1.000000e+00 : f32
    %19 = vector.broadcast %cst_10 : f32 to vector<1x64xf32>
    %20 = arith.addf %18, %19 : vector<1x64xf32>
    %21 = vector.extract_strided_slice %4 {offsets = [0, 0], sizes = [1, 64], strides = [1, 1]} : vector<4x64xf32> to vector<1x64xf32>
    %cst_11 = arith.constant 5.000000e-01 : f32
    %22 = vector.broadcast %cst_11 : f32 to vector<1x64xf32>
    %23 = arith.mulf %22, %15 : vector<1x64xf32>
    %24 = arith.addf %21, %23 : vector<1x64xf32>
    %25 = vector.extract_strided_slice %4 {offsets = [1, 0], sizes = [1, 64], strides = [1, 1]} : vector<4x64xf32> to vector<1x64xf32>
    %cst_12 = arith.constant 5.000000e-01 : f32
    %26 = vector.broadcast %cst_12 : f32 to vector<1x64xf32>
    %27 = arith.mulf %26, %20 : vector<1x64xf32>
    %28 = arith.addf %25, %27 : vector<1x64xf32>
    %29 = arith.subf %24, %7 : vector<1x64xf32>
    %30 = arith.mulf %29, %9 : vector<1x64xf32>
    %cst_13 = arith.constant 0.000000e+00 : f32
    %31 = vector.broadcast %cst_13 : f32 to vector<1x64xf32>
    %32 = arith.subf %30, %31 : vector<1x64xf32>
    %cst_14 = arith.constant 1.000000e+01 : f32
    %33 = vector.broadcast %cst_14 : f32 to vector<1x64xf32>
    %34 = arith.mulf %32, %33 : vector<1x64xf32>
    %35 = arith.subf %28, %8 : vector<1x64xf32>
    %36 = arith.mulf %35, %10 : vector<1x64xf32>
    %cst_15 = arith.constant 0.000000e+00 : f32
    %37 = vector.broadcast %cst_15 : f32 to vector<1x64xf32>
    %38 = arith.subf %36, %37 : vector<1x64xf32>
    %cst_16 = arith.constant 1.000000e+01 : f32
    %39 = vector.broadcast %cst_16 : f32 to vector<1x64xf32>
    %40 = arith.mulf %38, %39 : vector<1x64xf32>
    %41 = arith.mulf %15, %9 : vector<1x64xf32>
    %42 = math.log %41 : vector<1x64xf32>
    %cst_17 = arith.constant 0.000000e+00 : f32
    %43 = vector.broadcast %cst_17 : f32 to vector<1x64xf32>
    %44 = arith.subf %42, %43 : vector<1x64xf32>
    %cst_18 = arith.constant 5.000000e+00 : f32
    %45 = vector.broadcast %cst_18 : f32 to vector<1x64xf32>
    %46 = arith.mulf %44, %45 : vector<1x64xf32>
    %47 = arith.mulf %20, %10 : vector<1x64xf32>
    %48 = math.log %47 : vector<1x64xf32>
    %cst_19 = arith.constant 0.000000e+00 : f32
    %49 = vector.broadcast %cst_19 : f32 to vector<1x64xf32>
    %50 = arith.subf %48, %49 : vector<1x64xf32>
    %cst_20 = arith.constant 5.000000e+00 : f32
    %51 = vector.broadcast %cst_20 : f32 to vector<1x64xf32>
    %52 = arith.mulf %50, %51 : vector<1x64xf32>
    %53 = vector.extract_strided_slice %2 {offsets = [0, 0], sizes = [1, 64], strides = [1, 1]} : vector<4x64xf32> to vector<1x64xf32>
    %54 = arith.subf %53, %34 : vector<1x64xf32>
    %55 = math.absf %54 : vector<1x64xf32>
    %cst_21 = arith.constant 1.000000e+00 : f32
    %56 = vector.broadcast %cst_21 : f32 to vector<1x64xf32>
    %57 = arith.cmpf olt, %55, %56 : vector<1x64xf32>
    %cst_22 = arith.constant 5.000000e-01 : f32
    %58 = vector.broadcast %cst_22 : f32 to vector<1x64xf32>
    %59 = arith.mulf %58, %54 : vector<1x64xf32>
    %60 = arith.mulf %59, %54 : vector<1x64xf32>
    %cst_23 = arith.constant 5.000000e-01 : f32
    %61 = vector.broadcast %cst_23 : f32 to vector<1x64xf32>
    %62 = arith.subf %55, %61 : vector<1x64xf32>
    %63 = arith.select %57, %60, %62 : vector<1x64xi1>, vector<1x64xf32>
    %64 = vector.extract_strided_slice %2 {offsets = [1, 0], sizes = [1, 64], strides = [1, 1]} : vector<4x64xf32> to vector<1x64xf32>
    %65 = arith.subf %64, %40 : vector<1x64xf32>
    %66 = math.absf %65 : vector<1x64xf32>
    %cst_24 = arith.constant 1.000000e+00 : f32
    %67 = vector.broadcast %cst_24 : f32 to vector<1x64xf32>
    %68 = arith.cmpf olt, %66, %67 : vector<1x64xf32>
    %cst_25 = arith.constant 5.000000e-01 : f32
    %69 = vector.broadcast %cst_25 : f32 to vector<1x64xf32>
    %70 = arith.mulf %69, %65 : vector<1x64xf32>
    %71 = arith.mulf %70, %65 : vector<1x64xf32>
    %cst_26 = arith.constant 5.000000e-01 : f32
    %72 = vector.broadcast %cst_26 : f32 to vector<1x64xf32>
    %73 = arith.subf %66, %72 : vector<1x64xf32>
    %74 = arith.select %68, %71, %73 : vector<1x64xi1>, vector<1x64xf32>
    %75 = arith.addf %63, %74 : vector<1x64xf32>
    %76 = vector.extract_strided_slice %2 {offsets = [2, 0], sizes = [1, 64], strides = [1, 1]} : vector<4x64xf32> to vector<1x64xf32>
    %77 = arith.subf %76, %46 : vector<1x64xf32>
    %78 = math.absf %77 : vector<1x64xf32>
    %cst_27 = arith.constant 1.000000e+00 : f32
    %79 = vector.broadcast %cst_27 : f32 to vector<1x64xf32>
    %80 = arith.cmpf olt, %78, %79 : vector<1x64xf32>
    %cst_28 = arith.constant 5.000000e-01 : f32
    %81 = vector.broadcast %cst_28 : f32 to vector<1x64xf32>
    %82 = arith.mulf %81, %77 : vector<1x64xf32>
    %83 = arith.mulf %82, %77 : vector<1x64xf32>
    %cst_29 = arith.constant 5.000000e-01 : f32
    %84 = vector.broadcast %cst_29 : f32 to vector<1x64xf32>
    %85 = arith.subf %78, %84 : vector<1x64xf32>
    %86 = arith.select %80, %83, %85 : vector<1x64xi1>, vector<1x64xf32>
    %87 = arith.addf %75, %86 : vector<1x64xf32>
    %88 = vector.extract_strided_slice %2 {offsets = [3, 0], sizes = [1, 64], strides = [1, 1]} : vector<4x64xf32> to vector<1x64xf32>
    %89 = arith.subf %88, %52 : vector<1x64xf32>
    %90 = math.absf %89 : vector<1x64xf32>
    %cst_30 = arith.constant 1.000000e+00 : f32
    %91 = vector.broadcast %cst_30 : f32 to vector<1x64xf32>
    %92 = arith.cmpf olt, %90, %91 : vector<1x64xf32>
    %cst_31 = arith.constant 5.000000e-01 : f32
    %93 = vector.broadcast %cst_31 : f32 to vector<1x64xf32>
    %94 = arith.mulf %93, %89 : vector<1x64xf32>
    %95 = arith.mulf %94, %89 : vector<1x64xf32>
    %cst_32 = arith.constant 5.000000e-01 : f32
    %96 = vector.broadcast %cst_32 : f32 to vector<1x64xf32>
    %97 = arith.subf %90, %96 : vector<1x64xf32>
    %98 = arith.select %92, %95, %97 : vector<1x64xi1>, vector<1x64xf32>
    %99 = arith.addf %87, %98 : vector<1x64xf32>
    %100 = arith.mulf %99, %6 : vector<1x64xf32>
    %cst_33 = arith.constant dense<0.000000e+00> : vector<1xf32>
    %101 = vector.multi_reduction <add>, %100, %cst_33 [1] : vector<1x64xf32> to vector<1xf32>
    %102 = vector.shape_cast %101 : vector<1xf32> to vector<1x1xf32>
    %c0_i32 = arith.constant 0 : i32
    %103 = arith.cmpi eq, %arg1, %c0_i32 : i32
    %104 = arith.extui %103 : i1 to i32
    %c0_i32_34 = arith.constant 0 : i32
    %105 = arith.cmpi ne, %104, %c0_i32_34 : i32
    scf.if %105 {
      %cst_54 = arith.constant 0.000000e+00 : f32
      %136 = vector.broadcast %cst_54 : f32 to vector<1x1xf32>
      %c0_55 = arith.constant 0 : index
      %c0_56 = arith.constant 0 : index
      %c0_57 = arith.constant 0 : index
      %137 = vector.load %arg9[%c0_55, %c0_56, %c0_57] : memref<1x1x1xf32, #tpu.memory_space<vmem>>, vector<1x1x1xf32>
      %138 = vector.shape_cast %137 : vector<1x1x1xf32> to vector<1x1xf32>
      %139 = vector.shape_cast %136 : vector<1x1xf32> to vector<1x1x1xf32>
      tpu.vector_store %arg9[%c0_55, %c0_56, %c0_57], %139 {strides = array<i32>} : memref<1x1x1xf32, #tpu.memory_space<vmem>>, vector<1x1x1xf32>,
    } else {
    }
    %c0_35 = arith.constant 0 : index
    %c0_36 = arith.constant 0 : index
    %c0_37 = arith.constant 0 : index
    %106 = vector.load %arg9[%c0_35, %c0_36, %c0_37] : memref<1x1x1xf32, #tpu.memory_space<vmem>>, vector<1x1x1xf32>
    %107 = vector.shape_cast %106 : vector<1x1x1xf32> to vector<1x1xf32>
    %108 = arith.addf %107, %102 : vector<1x1xf32>
    %c0_38 = arith.constant 0 : index
    %c0_39 = arith.constant 0 : index
    %c0_40 = arith.constant 0 : index
    %109 = vector.load %arg9[%c0_38, %c0_39, %c0_40] : memref<1x1x1xf32, #tpu.memory_space<vmem>>, vector<1x1x1xf32>
    %110 = vector.shape_cast %109 : vector<1x1x1xf32> to vector<1x1xf32>
    %111 = vector.shape_cast %108 : vector<1x1xf32> to vector<1x1x1xf32>
    tpu.vector_store %arg9[%c0_38, %c0_39, %c0_40], %111 {strides = array<i32>} : memref<1x1x1xf32, #tpu.memory_space<vmem>>, vector<1x1x1xf32>,
    %c0_41 = arith.constant 0 : index
    %c0_42 = arith.constant 0 : index
    %c0_43 = arith.constant 0 : index
    %112 = vector.load %arg5[%c0_41, %c0_42, %c0_43] : memref<1x8x64xf32, #tpu.memory_space<vmem>>, vector<1x8x64xf32>
    %113 = vector.shape_cast %112 : vector<1x8x64xf32> to vector<8x64xf32>
    %c0_44 = arith.constant 0 : index
    %c0_45 = arith.constant 0 : index
    %c0_46 = arith.constant 0 : index
    %114 = vector.load %arg6[%c0_44, %c0_45, %c0_46] : memref<1x1x64xi32, #tpu.memory_space<vmem>>, vector<1x1x64xi32>
    %115 = vector.shape_cast %114 : vector<1x1x64xi32> to vector<1x64xi32>
    %cst_47 = arith.constant dense<0xFF800000> : vector<64xf32>
    %116 = vector.multi_reduction <maximumf>, %113, %cst_47 [0] : vector<8x64xf32> to vector<64xf32>
    %117 = vector.shape_cast %116 : vector<64xf32> to vector<1x64xf32>
    %118 = vector.broadcast %117 : vector<1x64xf32> to vector<8x64xf32>
    %119 = arith.subf %113, %118 : vector<8x64xf32>
    %120 = math.exp %119 : vector<8x64xf32>
    %cst_48 = arith.constant dense<0.000000e+00> : vector<64xf32>
    %121 = vector.multi_reduction <add>, %120, %cst_48 [0] : vector<8x64xf32> to vector<64xf32>
    %122 = vector.shape_cast %121 : vector<64xf32> to vector<1x64xf32>
    %123 = math.log %122 : vector<1x64xf32>
    %124 = arith.addf %123, %117 : vector<1x64xf32>
    %125 = tpu.iota {dimensions = array<i32: 0>} : vector<8x64xi32>
    %126 = vector.broadcast %115 : vector<1x64xi32> to vector<8x64xi32>
    %127 = arith.cmpi eq, %125, %126 : vector<8x64xi32>
    %cst_49 = arith.constant 0.000000e+00 : f32
    %128 = vector.broadcast %cst_49 : f32 to vector<8x64xf32>
    %129 = arith.select %127, %113, %128 : vector<8x64xi1>, vector<8x64xf32>
    %cst_50 = arith.constant dense<0.000000e+00> : vector<64xf32>
    %130 = vector.multi_reduction <add>, %129, %cst_50 [0] : vector<8x64xf32> to vector<64xf32>
    %131 = vector.shape_cast %130 : vector<64xf32> to vector<1x64xf32>
    %132 = arith.subf %124, %131 : vector<1x64xf32>
    %c0_51 = arith.constant 0 : index
    %c0_52 = arith.constant 0 : index
    %c0_53 = arith.constant 0 : index
    %133 = vector.load %arg8[%c0_51, %c0_52, %c0_53] : memref<1x1x64xf32, #tpu.memory_space<vmem>>, vector<1x1x64xf32>
    %134 = vector.shape_cast %133 : vector<1x1x64xf32> to vector<1x64xf32>
    %135 = vector.shape_cast %132 : vector<1x64xf32> to vector<1x1x64xf32>
    tpu.vector_store %arg8[%c0_51, %c0_52, %c0_53], %135 {strides = array<i32>} : memref<1x1x64xf32, #tpu.memory_space<vmem>>, vector<1x1x64xf32>,
    return
  }
  func.func @transform_0(%arg0: i32, %arg1: i32) -> (i32, i32) {
    %c0_i32 = arith.constant 0 : i32
    %c0_i32_0 = arith.constant 0 : i32
    return %c0_i32, %arg1 : i32, i32
  }
  func.func @transform_1(%arg0: i32, %arg1: i32) -> (i32, i32, i32) {
    %c0_i32 = arith.constant 0 : i32
    %c0_i32_0 = arith.constant 0 : i32
    return %arg0, %c0_i32, %arg1 : i32, i32, i32
  }
  func.func @transform_2(%arg0: i32, %arg1: i32) -> (i32, i32, i32) {
    %c0_i32 = arith.constant 0 : i32
    %c0_i32_0 = arith.constant 0 : i32
    return %arg0, %c0_i32, %arg1 : i32, i32, i32
  }
  func.func @transform_3(%arg0: i32, %arg1: i32) -> (i32, i32, i32) {
    %c0_i32 = arith.constant 0 : i32
    %c0_i32_0 = arith.constant 0 : i32
    return %arg0, %c0_i32, %arg1 : i32, i32, i32
  }
  func.func @transform_4(%arg0: i32, %arg1: i32) -> (i32, i32, i32) {
    %c0_i32 = arith.constant 0 : i32
    %c0_i32_0 = arith.constant 0 : i32
    return %arg0, %c0_i32, %arg1 : i32, i32, i32
  }
  func.func @transform_5(%arg0: i32, %arg1: i32) -> (i32, i32, i32) {
    %c0_i32 = arith.constant 0 : i32
    %c0_i32_0 = arith.constant 0 : i32
    return %arg0, %c0_i32, %arg1 : i32, i32, i32
  }
  func.func @transform_6(%arg0: i32, %arg1: i32) -> (i32, i32, i32) {
    %c0_i32 = arith.constant 0 : i32
    %c0_i32_0 = arith.constant 0 : i32
    return %arg0, %c0_i32, %arg1 : i32, i32, i32
  }
  func.func @transform_7(%arg0: i32, %arg1: i32) -> (i32, i32, i32) {
    %c0_i32 = arith.constant 0 : i32
    %c0_i32_0 = arith.constant 0 : i32
    %c0_i32_1 = arith.constant 0 : i32
    return %arg0, %c0_i32, %c0_i32_0 : i32, i32, i32
  }
}

</mosaic_0001>

<bundles_post_ra>
// kernel: lt.77
= control target key start
LH: loop header
LB: loop body
LE: loop exit
PB: predicated region body
PF: predicated region fallthrough
CT: control target
= control target key end

     0   :  { %s20_s0 = inlined_call_operand.<no memory space> [shape: s32[], index: 0, kind: input, shape index: {}]   ;;  %s21_s1 = inlined_call_operand.vmem [shape: s32[2], index: 1, kind: output, shape index: {}]  }
   0x1   :  { %v2_v0 = vstv %s20_s0 }
   0x2   :  { %3 = vst [vmem:[%s21_s1] sm:$0x1] %v2_v0 }

// kernel: multibox_loss.2
= control target key start
LH: loop header
LB: loop body
LE: loop exit
PB: predicated region body
PF: predicated region fallthrough
CT: control target
= control target key end

     0   :  { %s1019_s0 = inlined_call_operand.vmem [shape: s32[2], index: 0, kind: input, shape index: {}]   ;;  %s1020_s1 = inlined_call_operand.vmem [shape: f32[4,64], index: 1, kind: input, shape index: {}]   ;;  %s1021_s2 = inlined_call_operand.vmem [shape: f32[2,8,5], index: 2, kind: input, shape index: {}]   ;;  %s1022_s3 = inlined_call_operand.vmem [shape: f32[2,1,64], index: 3, kind: output, shape index: {0}]   ;;  %s1023_s4 = inlined_call_operand.vmem [shape: s32[2,1,64], index: 4, kind: output, shape index: {1}]   ;;  %s1024_s5 = inlined_call_operand.hbm [shape: f32[2,8,1], index: 5, kind: output, shape index: {2}]   ;;  %s1025_s6 = inlined_call_operand.vmem [shape: s32[2,8,1], index: 6, kind: output, shape index: {3}]  }
   0x1   :  { %s12_s23 = sshll.u32 %s1019_s0, 4  ;;  %s13_s23 = int_to_ptr.vmem [resolvable:$true] %s12_s23 }
   0x2   :  { %s726_s24 = scalar_lea.vmem %s13_s23, 16  ;;  %p731_p1 = scmp.lt.s32.totalorder %s13_s23, %s13_s23 }
   0x3   :  { %p727_p0 = scmp.ne.s32.totalorder %s13_s23, %s726_s24  ;;  %p732_p2 = scmp.lt.s32.totalorder %s726_s24, %s726_s24 }
   0x5   :  { %p733_p3 = por %p732_p2, %p731_p1 }
   0x7   :  { %p734_p4 = pnand %p733_p3, %p727_p0 }
   0x9   :  { %737 = shalt.err (!%p734_p4)  }
   0xa   :  { %s820_s25 = smov [#allocation3]  }
   0xb   :  { %15 = dma.vmem_to_smem %s13_s23, 16, %s820_s25, [#allocation2] }
   0xc   :  { %790 = dma.done.wait [#allocation2], 16 }
   0xd   :  { %791 = vsyncadd [#allocation2], 4294967280 }
   0xe   :  { %17 = sfence }
   0xf   :  { %18 = vsyncpa [#allocation5], 0 }
  0x10   :  { %20 = vsyncpa [#allocation5 + $0x1], 0  ;;  %s867_s26 = smov 0   ;;  %s869_s27 = smov 0  }
  0x11   :  { %s871_s0 = smov 0   ;;  %s873_s28 = smov 0  }
  0x12   :  { %s875_s29 = smov 0   ;;  %s877_s30 = smov 0  }
  0x13 LB: > { %s642_s7 = sadd.s32 4294967295, %s818_s30   ;;  %s643_s8 = sadd.s32 4294967294, %s818_s30   ;;  %s818_s30 = sphi %s877_s30, %s26_s30   ;;  %s814_s29 = sphi %s875_s29, %s1032_s29   ;;  %s810_s28 = sphi %s873_s28, %s1031_s28   ;;  %s806_s0 = sphi %s871_s0, %s1030_s0   ;;  %s802_s27 = sphi %s869_s27, %s1029_s27   ;;  %s798_s26 = sphi %s867_s26, %s1028_s26  }
  0x14   : > { %s38_s9 = sadd.s32 1, %s814_s29  ;;  %s153_s10 = sadd.s32 1, %s806_s0 }
  0x15   : > { %p40_p5 = scmp.ge.s32.totalorder %s38_s9, 2  ;;  %p163_p6 = scmp.ne.s32.totalorder %s806_s0, %s802_s27 }
  0x16   : > { %p164_p7 = scmp.eq.s32.totalorder %s642_s7, 1  ;;  %p169_p8 = scmp.ne.s32.totalorder %s802_s27, %s798_s26 }
  0x17   : > { %s1034_s9 = smov (%p40_p5, %s38_s9), 0  ;;  %p170_p10 = scmp.eq.s32.totalorder %s643_s8, 1 }
  0x18   : > { %p907_p9 = por %p164_p7, %p163_p6  ;;  %s150_s12 = ssub.s32 %s814_s29, %s1034_s9 }
  0x19   : > { %p647_p11 = scmp.ge.s32.totalorder %s818_s30, 1  ;;  %p151_p12 = scmp.eq.s32.totalorder %s150_s12, 0 }
  0x1a   : > { %p914_p13 = por %p170_p10, %p169_p8  ;;  %p228_p0 = scmp.lt.s32.totalorder %s818_s30, 3 }
  0x1b   : > { %s920_s14 = scalar_select %p151_p12, %s806_s0, %s153_s10  }
  0x1c   : > { %p229_p1 = pnand %p647_p11, %p228_p0 }
  0x1d   : > { %p279_p2 = scmp.lt.s32.totalorder (!%p229_p1), %s810_s28, 1  ;;  %v821_v0 = vmov (!%p229_p1), 2   ;;  %v822_v1 = vmov (!%p229_p1), 3   ;;  %vm434_vm0 = vcmask (!%p229_p1), 7168   ;;  %v823_v3 = vmov (!%p229_p1), 0   ;;  %s824_s23 = smov (!%p229_p1), 2  }
  0x1e   : > { %232 = sbr.rel (%p229_p1) target bundleno = 866 (0x362), region = 28  ;;  %718 = vset.pattern.permute.xlu1 (!%p229_p1), %v821_v0  ;;  %720 = vset.pattern.permute.xlu0 (!%p229_p1), %v822_v1  ;;  %v825_v4 = vmov (!%p229_p1), 1   ;;  %s826_s24 = smov (!%p229_p1), 127   ;;  %v321_v10 = vlaneseq (!%p229_p1)  ;;  %v299_v13 = vld [vmem:[%s1020_s1] sm:$0xf] (!%p229_p1)  ;;  %vm383_vm2 = vcmask (!%p229_p1), 523264  }
  0x1f   : > { %v302_v19 = vrot.slane (!%p229_p1), %v299_v13, 6  ;;  %s377_s8 = sld [smem:[#allocation3 + %s810_s28]] (!%p229_p1)  ;;  %s266_s10 = sand.u32 (!%p229_p1), 1, %s802_s27   ;;  %v827_v54 = vmov (!%p229_p1), -1.0   ;;  %vm403_vm3 = vcmask (!%p229_p1), 516096  }
  0x20   : > { %v322_v12 = vshrl.u32 (!%p229_p1), %v321_v10, 7  ;;  %s648_s12 = sshll.u32 (!%p229_p1), %s266_s10, 3  ;;  %s828_s18 = smov (!%p229_p1), [#allocation4]  }
  0x21   : > { %v304_v24 = vsub.f32 (!%p229_p1), %v299_v13, %v302_v19 }
  0x22   : > { %v323_v14 = vsub.s32 (!%p229_p1), 2, %v322_v12  ;;  %v332_v16 = vsub.s32 (!%p229_p1), 0, %v322_v12  ;;  %v353_v17 = vsub.s32 (!%p229_p1), 1, %v322_v12  ;;  %v344_v18 = vsub.s32 (!%p229_p1), 3, %v322_v12 }
  0x23   : > { %v305_v31 = vadd.f32 (!%p229_p1), 1.0, %v304_v24 }
  0x24   : > { %v324_v20 = vrot.slane (!%p229_p1), %v299_v13, %v323_v14  ;;  %v333_v21 = vrot.slane (!%p229_p1), %v299_v13, %v332_v16  ;;  %v354_v22 = vrot.slane (!%p229_p1), %v299_v13, %v353_v17  ;;  %v345_v23 = vrot.slane (!%p229_p1), %v299_v13, %v344_v18 }
  0x25   : > { %s924_s15 = scalar_select %p279_p2, %s810_s28, 1  ;;  %v313_v34 = vrot.slane %v305_v31, 1  ;;  %v380_v45 = vstv %s377_s8 }
  0x26   : > { %vm381_vm1 = vcmp.lt.s32.totalorder %v322_v12, %v380_v45 }
  0x27   : > { %s649_s16 = sshll.u32 %s924_s15, 3  ;;  %v315_v37 = vmul.f32 %v313_v34, %v305_v31 }
  0x28   : > { %s282_s19 = scalar_lea.vmem %s1021_s2, %s649_s16  ;;  %s933_s22 = scalar_lea.vmem %s1025_s6, %s649_s16 }
  0x29   : > { %v300_v2 = vld [vmem:[%s282_s19] sm:$0xff]  ;;  %436 = vst.msk [vmem:[%s933_s22] sm:$0xff] %vm434_vm0, %v823_v3  ;;  %v367_v40 = vrot.slane %v315_v37, %v323_v14  ;;  %s946_s16 = scalar_lea.vmem [#allocation4], %s648_s12  ;;  %s288_s19 = scalar_lea.vmem %s1022_s3, %s924_s15 }
  0x2a   : > { %307 = vrot.lane.b32.xlu0 %v300_v2, %s824_s23  ;;  %326 = vperm.xlu1 %718, %v300_v2   ;;  %435 = vst.msk [vmem:[%s946_s16] sm:$0xff] %vm434_vm0, %v827_v54  ;;  %s294_s23 = scalar_lea.vmem %s1023_s4, %s924_s15  ;;  %s652_s15 = sshll.u32 %s810_s28, 7 }
  0x2b   : > { %s972_s8 = scalar_lea.hbm %s1024_s5, %s652_s15  ;;  %s458_s12 = scalar_lea.sflag [#allocation5], %s266_s10 }
  0x2e   : > { %719 = vset.pattern.permute.xlu1 %v823_v3 }
  0x2f   : > { %335 = vperm.xlu1 %719, %v300_v2  }
  0x31   : > { %v437_v1 = vld [vmem:[%s946_s16] sm:$0xff] }
  0x33   : > { %721 = vset.pattern.permute.xlu1 %v825_v4 }
  0x34   : > { %356 = vperm.xlu1 %721, %v300_v2  }
  0x38   : > { %722 = vset.pattern.permute.xlu1 %v821_v0 }
  0x9c   : > { %v308_v5 = vpop.permute.xlu0 %307 }
  0x9d   : > { %v310_v6 = vsub.f32 %v300_v2, %v308_v5 }
  0x9f   : > { %v311_v7 = vadd.f32 1.0, %v310_v6 }
  0xa1   : > { %317 = vrot.lane.b32.xlu0 %v311_v7, %s826_s24  ;;  %s481_s24 = sshll.u32 %s946_s16, 4  ;;  %s482_s24 = int_to_ptr.vmem [resolvable:$true] %s481_s24 }
  0xa2   : > { %s738_s17 = scalar_lea.vmem %s482_s24, 128 }
  0xa3   : > { %p739_p3 = scmp.ne.s32.totalorder %s482_s24, %s738_s17 }
  0xa5   : > { %347 = vperm.xlu0 %720, %v300_v2   ;;  %v407_v2 = vand.u32 127, %v321_v10  ;;  %p740_p4 = pnand %p739_p3, %p907_p9 }
  0xa7   : > { %p741_p5 = pneg %p740_p4 }
  0xa9   : > { %723 = vset.pattern.permute.xlu0 %v821_v0  ;;  %v327_v11 = vpop.permute.xlu1 %326 }
  0xaa   : > { %v329_v27 = vmin.f32 %v324_v20, %v327_v11 }
  0xae   : > { %v336_v15 = vpop.permute.xlu1 %335 }
  0xaf   : > { %v338_v28 = vmax.f32 %v333_v21, %v336_v15 }
  0xb1   : > { %v339_v32 = vsub.f32 %v329_v27, %v338_v28 }
  0xb3   : > { %v357_v25 = vpop.permute.xlu1 %356  ;;  %v340_v35 = vadd.f32 1.0, %v339_v32 }
  0xb4   : > { %v359_v29 = vmax.f32 %v354_v22, %v357_v25 }
  0xb5   : > { %v341_v38 = vmax.f32 %v340_v35, 0.0 }
 0x113   : > { %v318_v8 = vpop.permute.xlu0 %317 }
 0x114   : > { %v320_v9 = vmul.f32 %v318_v8, %v311_v7 }
 0x116   : > { %370 = vperm.xlu1 %722, %v320_v9  }
 0x124   : > { %v348_v26 = vpop.permute.xlu0 %347 }
 0x125   : > { %v350_v30 = vmin.f32 %v345_v23, %v348_v26 }
 0x127   : > { %v360_v33 = vsub.f32 %v350_v30, %v359_v29 }
 0x129   : > { %v361_v36 = vadd.f32 1.0, %v360_v33 }
 0x12b   : > { %v362_v39 = vmax.f32 %v361_v36, 0.0 }
 0x12d   : > { %v363_v42 = vmul.f32 %v362_v39, %v341_v38 }
 0x195   : > { %v371_v41 = vpop.permute.xlu1 %370 }
 0x196   : > { %v373_v43 = vadd.f32 %v371_v41, %v367_v40 }
 0x198   : > { %v374_v44 = vsub.f32 %v373_v43, %v363_v42 }
 0x19a   : > { %724 = vrcp.f32 %v374_v44 }
 0x1a4   : > { %v725_v46 = vpop.eup %724 }
 0x1a5   : > { %v376_v47 = vmul.f32 %v725_v46, %v363_v42 }
 0x1a7   : > { %v382_v48 = vsel %vm381_vm1, %v376_v47, 0.0 }
 0x1a8   : > { %v384_v49 = vsel %vm383_vm2, %v382_v48, -inf }
 0x1a9   : > { %408 = vmax.xlane.f32.xlu0 %v384_v49  ;;  %v385_v50 = vrot.slane %v384_v49, 4 }
 0x1ab   : > { %v386_v51 = vmax.f32 %v384_v49, %v385_v50 }
 0x1ad   : > { %v387_v52 = vrot.slane %v386_v51, 2 }
 0x1af   : > { %v388_v53 = vmax.f32 %v386_v51, %v387_v52 }
 0x1b1   : > { %v389_v55 = vrot.slane %v388_v53, 1 }
 0x1b3   : > { %v390_v56 = vmax.f32 %v388_v53, %v389_v55 }
 0x1b5   : > { %vm391_vm4 = vcmp.eq.f32.partialorder %v382_v48, %v390_v56  ;;  %404 = vst.msk [vmem:[%s288_s19] sm:$0x1] %vm403_vm3, %v390_v56  ;;  %s742_s19 = sshll.u32 %s828_s18, 4  ;;  %s743_s19 = int_to_ptr.vmem [resolvable:$false] %s742_s19 }
 0x1b6   : > { %v392_v57 = vsel %vm391_vm4, %v322_v12, 8  ;;  %s744_s20 = scalar_lea.vmem %s743_s19, 256  ;;  %p745_p6 = scmp.lt.s32.totalorder %s482_s24, %s743_s19 }
 0x1b7   : > { %v393_v58 = vsel %vm383_vm2, %v392_v57, 2147483647  ;;  %p746_p7 = scmp.lt.s32.totalorder %s744_s20, %s738_s17 }
 0x1b8   : > { %v394_v59 = vrot.slane %v393_v58, 4 }
 0x1b9   : > { %p747_p8 = por %p746_p7, %p745_p6 }
 0x1ba   : > { %vm395_vm5 = vcmp.lt.s32.totalorder %v393_v58, %v394_v59 }
 0x1bb   : > { %v396_v60 = vsel %vm395_vm5, %v393_v58, %v394_v59  ;;  %p748_p10 = pnand %p747_p8, %p741_p5 }
 0x1bc   : > { %v397_v61 = vrot.slane %v396_v60, 2 }
 0x1be   : > { %vm398_vm6 = vcmp.lt.s32.totalorder %v396_v60, %v397_v61 }
 0x1bf   : > { %v399_v62 = vsel %vm398_vm6, %v396_v60, %v397_v61 }
 0x1c0   : > { %v400_v63 = vrot.slane %v399_v62, 1 }
 0x1c2   : > { %vm401_vm7 = vcmp.lt.s32.totalorder %v399_v62, %v400_v63 }
 0x1c3   : > { %v402_v0 = vsel %vm401_vm7, %v399_v62, %v400_v63 }
 0x1c4   : > { %405 = vst.msk [vmem:[%s294_s23] sm:$0x1] %vm403_vm3, %v402_v0 }
 0x236   : > { %v409_v3 = vpop.xlane.xlu0 %408 }
 0x237   : > { %vm410_vm8 = vcmp.eq.f32.partialorder %v382_v48, %v409_v3  ;;  %vm438_vm9 = vcmp.gt.f32.partialorder %v409_v3, %v437_v1 }
 0x238   : > { %v439_v4 = vsel %vm438_vm9, %v409_v3, %v437_v1  ;;  %v411_v5 = vsel %vm410_vm8, %v407_v2, 64 }
 0x239   : > { %441 = vst.msk [vmem:[%s946_s16] sm:$0xff] %vm434_vm0, %v439_v4  ;;  %v412_v6 = vsel %vm383_vm2, %v411_v5, 2147483647 }
 0x23a   : > { %v414_v7 = vshra.s32 %v412_v6, 16  ;;  %v413_v9 = vand.u32 65535, %v412_v6 }
 0x23c   : > { %v416_v8 = vcvt.s32.f32 %v414_v7  ;;  %v415_v10 = vcvt.s32.f32 %v413_v9 }
 0x23e   : > { %417 = vmin.xlane.f32.xlu1 %v416_v8 }
 0x2cb   : > { %v418_v11 = vpop.xlane.xlu1 %417 }
 0x2cc   : > { %vm419_vm10 = vcmp.eq.f32.partialorder %v416_v8, %v418_v11 }
 0x2cd   : > { %v420_v12 = vsel %vm419_vm10, %v415_v10, inf }
 0x2ce   : > { %421 = vmin.xlane.f32.xlu0 %v420_v12 }
 0x2cf   : > { %751 = shalt.err (!%p748_p10)
}
 0x2d0   : > { %s752_s28 = scalar_lea.hbm %s972_s8, 128  ;;  %s756_s21 = scalar_lea.hbm %s1024_s5, 256 }
 0x2d1   : > { %p753_p11 = scmp.ne.s32.totalorder %s972_s8, %s752_s28  ;;  %p757_p1 = scmp.lt.u32.totalorder %s972_s8, %s1024_s5 }
 0x2d2   : > { %p758_p2 = scmp.lt.u32.totalorder %s756_s21, %s752_s28  ;;  %p760_p4 = scmp.lt.u32.totalorder %s752_s28, %s972_s8 }
 0x2d3   : > { %p754_p12 = pnand %p753_p11, %p907_p9 }
 0x2d4   : > { %p759_p3 = por %p758_p2, %p757_p1 }
 0x2d5   : > { %p755_p0 = pneg %p754_p12 }
 0x2d6   : > { %p761_p5 = por %p760_p4, %p759_p3 }
 0x2d8   : > { %p762_p6 = pnand %p761_p5, %p755_p0 }
 0x2da   : > { %765 = shalt.err (!%p762_p6)
}
 0x2db   : > { %655 = dma.vmem_to_hbm [thread:$0]  (%p907_p9), %s482_s24, 128, %s972_s8, %s458_s12   ;;  %v424_v13 = vcvt.f32.s32 %v418_v11  ;;  %v442_v17 = vld [vmem:[%s933_s22] sm:$0xff] }
 0x2dd   : > { %v425_v15 = vshll.u32 %v424_v13, 16 }
 0x35b   : > { %v422_v14 = vpop.xlane.xlu0 %421 }
 0x35c   : > { %v423_v16 = vcvt.f32.s32 %v422_v14 }
 0x35e   : > { %v426_v18 = vadd.s32 %v425_v15, %v423_v16 }
 0x360   : > { %v443_v19 = vsel %vm438_vm9, %v426_v18, %v442_v17 }
 0x361   : > { %444 = vst.msk [vmem:[%s933_s22] sm:$0xff] %vm434_vm0, %v443_v19 }
 0x362 PF: > { %p661_p7 = scmp.ge.s32.totalorder %s818_s30, 2  ;;  %s514_s11 = sand.u32 1, %s798_s26  }
 0x363   : > { %s515_s25 = scalar_lea.sflag [#allocation5], %s514_s11 }
 0x364   : > { %p658_p8 = pnand %p661_p7, %p914_p13 }
 0x366   : > { %793 = dma.done.wait (!%p658_p8), %s515_s25, 128  }
 0x367   : > { %795 = vsyncadd (!%p658_p8), %s515_s25, 4294967168  ;;  %s26_s30 = sadd.s32 1, %s818_s30   ;;  %s1028_s26 = smov %s802_s27 }
 0x368   : > { %p23_p9 = scmp.ge.s32.totalorder %s26_s30, 4   ;;  %s1029_s27 = smov %s806_s0 }
 0x369   : > { %s1030_s0 = smov %s920_s14  ;;  %s1031_s28 = smov %s814_s29 }
 0x36a   : > { %s1032_s29 = smov %s1034_s9  ;;  %25 = sbr.rel (!%p23_p9) target bundleno = 19 (0x13), region = 106 }
 0x371   :  { %527 = vsyncpa [#allocation5], 1 }
 0x372   :  { %529 = vsyncpa [#allocation5 + $0x1], 1 }

// kernel: multibox_loss.3
= control target key start
LH: loop header
LB: loop body
LE: loop exit
PB: predicated region body
PF: predicated region fallthrough
CT: control target
= control target key end

     0   :  { %s812_s24 = smov 0   ;;  %s814_s25 = smov 0   ;;  %s880_s0 = inlined_call_operand.vmem [shape: f32[4,64], index: 0, kind: input, shape index: {}]   ;;  %s881_s1 = inlined_call_operand.vmem [shape: f32[2,4,64], index: 1, kind: input, shape index: {}]   ;;  %s882_s2 = inlined_call_operand.vmem [shape: f32[2,4,64], index: 2, kind: input, shape index: {}]   ;;  %s883_s3 = inlined_call_operand.vmem [shape: f32[2,8,64], index: 3, kind: input, shape index: {}]   ;;  %s884_s4 = inlined_call_operand.vmem [shape: s32[2,1,64], index: 4, kind: input, shape index: {}]   ;;  %s885_s5 = inlined_call_operand.vmem [shape: f32[2,1,64], index: 5, kind: input, shape index: {}]   ;;  %s886_s6 = inlined_call_operand.vmem [shape: f32[2,1,64], index: 6, kind: output, shape index: {0}]   ;;  %s887_s7 = inlined_call_operand.vmem [shape: f32[2,1,1], index: 7, kind: output, shape index: {1}]  }
   0x1   :  { %s816_s26 = smov 0  }
   0x2 LB: > { %s30_s27 = sadd.s32 1, %s765_s25  ;;  %p707_p0 = scmp.ge.s32.totalorder %s769_s26, 1  ;;  %s769_s26 = sphi %s816_s26, %s18_s26   ;;  %s765_s25 = sphi %s814_s25, %s889_s25   ;;  %s761_s24 = sphi %s812_s24, %s888_s24  }
   0x3   : > { %p32_p1 = scmp.ge.s32.totalorder %s30_s27, 2  ;;  %p321_p2 = scmp.lt.s32.totalorder %s769_s26, 3 }
   0x5   : > { %s891_s27 = smov (%p32_p1, %s30_s27), 0  ;;  %p322_p3 = pnand %p707_p0, %p321_p2 }
   0x6   : > { %p393_p4 = scmp.lt.s32.totalorder (!%p322_p3), %s761_s24, 1  ;;  %vm501_vm0 = vcmask (!%p322_p3), 523264   ;;  %v435_v6 = vld [vmem:[%s880_s0] sm:$0xf] (!%p322_p3)  ;;  %v522_v24 = vlaneseq (!%p322_p3)  ;;  %vm485_vm4 = vcmask (!%p322_p3), 516096   ;;  %vm493_vm5 = vcmask (!%p322_p3), 0  }
   0x7   : > { %325 = sbr.rel (%p322_p3) target bundleno = 202 (0xca), region = 44  ;;  %v451_v15 = vrot.slane (!%p322_p3), %v435_v6, 2 }
   0x8   : > { %v523_v30 = vshrl.u32 (!%p322_p3), %v522_v24, 7 }
   0xe   : > { %s893_s24 = smov (!%p393_p4, %s761_s24), 1 }
   0xf   : > { %s708_s28 = sshll.u32 %s893_s24, 2  ;;  %s710_s29 = sshll.u32 %s893_s24, 3 }
  0x10   : > { %s406_s9 = scalar_lea.vmem %s882_s2, %s708_s28  ;;  %s413_s12 = scalar_lea.vmem %s883_s3, %s710_s29 }
  0x11   : > { %v437_v0 = vld [vmem:[%s406_s9] sm:$0xf]  ;;  %s399_s17 = scalar_lea.vmem %s881_s1, %s708_s28  ;;  %s419_s20 = scalar_lea.vmem %s884_s4, %s893_s24 }
  0x12   : > { %v440_v1 = vrot.slane %v437_v0, 6  ;;  %v499_v2 = vld [vmem:[%s413_s12] sm:$0xff]  ;;  %s425_s23 = scalar_lea.vmem %s885_s5, %s893_s24  ;;  %s434_s30 = scalar_lea.vmem %s887_s7, %s893_s24 }
  0x13   : > { %v502_v3 = vsel %vm501_vm0, %v499_v2, -inf  ;;  %v436_v21 = vld [vmem:[%s399_s17] sm:$0xf]  ;;  %s431_s10 = scalar_lea.vmem %s886_s6, %s893_s24 }
  0x14   : > { %v442_v4 = vsub.f32 %v437_v0, %v440_v1  ;;  %v503_v5 = vrot.slane %v502_v3, 4  ;;  %v713_v32 = vld [vmem:[%s419_s20] ss:$0 sm:$0xff]  ;;  %v771_v1 = vmov 0.0  }
  0x15   : > { %vm528_vm2 = vcmp.eq.s32.totalorder %v523_v30, %v713_v32  ;;  %v438_v53 = vld [vmem:[%s425_s23] sm:$0x1]  ;;  %494 = vst.msk [vmem:[%s434_s30] sm:$0x1] %vm493_vm5, %v771_v1 }
  0x16   : > { %v443_v7 = vadd.f32 1.0, %v442_v4  ;;  %v504_v8 = vmax.f32 %v502_v3, %v503_v5  ;;  %v529_v42 = vsel %vm528_vm2, %v499_v2, 0.0 }
  0x17   : > { %v530_v50 = vsel %vm501_vm0, %v529_v42, 0.0 }
  0x18   : > { %v444_v9 = vmul.f32 0.5, %v443_v7  ;;  %v455_v10 = vmul.f32 %v443_v7, %v435_v6  ;;  %v505_v11 = vrot.slane %v504_v8, 2  ;;  %v531_v54 = vrot.slane %v530_v50, 4 }
  0x1a   : > { %v446_v12 = vrot.slane %v444_v9, 2  ;;  %741 = vlog2.f32 %v455_v10  ;;  %v506_v13 = vmax.f32 %v504_v8, %v505_v11  ;;  %v532_v59 = vadd.f32 %v531_v54, %v530_v50 }
  0x1c   : > { %v448_v14 = vadd.f32 %v446_v12, %v437_v0  ;;  %v507_v16 = vrot.slane %v506_v13, 1  ;;  %v533_v63 = vrot.slane %v532_v59, 2  ;;  %v495_v8 = vld [vmem:[%s434_s30] sm:$0x1] }
  0x1e   : > { %v449_v17 = vsub.f32 %v448_v14, %v435_v6  ;;  %v847_v18 = vmax.f32 %v506_v13, %v507_v16  ;;  %v534_v0 = vadd.f32 %v533_v63, %v532_v59 }
  0x20   : > { %v453_v19 = vmul.f32 %v451_v15, %v449_v17  ;;  %v509_v20 = vsub.f32 %v499_v2, %v847_v18  ;;  %v535_v2 = vrot.slane %v534_v0, 1 }
  0x22   : > { %v454_v22 = vmul.f32 10.0, %v453_v19  ;;  %v510_v23 = vmul.f32 1.442695, %v509_v20  ;;  %v536_v5 = vadd.f32 %v535_v2, %v534_v0 }
  0x24   : > { %v742_v25 = vpop.eup %741  ;;  %v459_v26 = vsub.f32 %v436_v21, %v454_v22  ;;  %743 = vpow2.f32 %v510_v23 }
  0x25   : > { %v457_v27 = vmul.f32 0.6931472, %v742_v25 }
  0x26   : > { %v460_v28 = vand.u32 2147483647, %v459_v26  ;;  %v462_v29 = vmul.f32 0.5, %v459_v26 }
  0x27   : > { %v458_v31 = vmul.f32 5.0, %v457_v27 }
  0x28   : > { %vm461_vm1 = vcmp.lt.f32.partialorder %v460_v28, 1.0  ;;  %v463_v33 = vmul.f32 %v462_v29, %v459_v26  ;;  %v711_v34 = vadd.f32 -0.5, %v460_v28 }
  0x29   : > { %v470_v35 = vsub.f32 %v436_v21, %v458_v31 }
  0x2a   : > { %v465_v36 = vsel %vm461_vm1, %v463_v33, %v711_v34 }
  0x2b   : > { %v467_v37 = vrot.slane %v465_v36, 1  ;;  %v471_v38 = vand.u32 2147483647, %v470_v35  ;;  %v473_v39 = vmul.f32 0.5, %v470_v35 }
  0x2d   : > { %vm472_vm3 = vcmp.lt.f32.partialorder %v471_v38, 1.0  ;;  %v474_v40 = vmul.f32 %v473_v39, %v470_v35  ;;  %v712_v41 = vadd.f32 -0.5, %v471_v38  ;;  %v469_v44 = vadd.f32 %v467_v37, %v465_v36 }
  0x2e   : > { %v744_v43 = vpop.eup %743 }
  0x2f   : > { %v476_v45 = vsel %vm472_vm3, %v474_v40, %v712_v41  ;;  %v512_v46 = vsel %vm501_vm0, %v744_v43, 0.0 }
  0x30   : > { %v478_v47 = vrot.slane %v476_v45, 2  ;;  %v481_v48 = vrot.slane %v476_v45, 3  ;;  %v513_v49 = vrot.slane %v512_v46, 4 }
  0x32   : > { %v480_v51 = vadd.f32 %v478_v47, %v469_v44  ;;  %v514_v52 = vadd.f32 %v513_v49, %v512_v46 }
  0x34   : > { %v483_v55 = vadd.f32 %v481_v48, %v480_v51  ;;  %v515_v56 = vrot.slane %v514_v52, 2 }
  0x36   : > { %v484_v57 = vmul.f32 %v483_v55, %v438_v53  ;;  %v516_v58 = vadd.f32 %v515_v56, %v514_v52 }
  0x38   : > { %v486_v60 = vsel %vm485_vm4, %v484_v57, 0.0  ;;  %v517_v61 = vrot.slane %v516_v58, 1 }
  0x39   : > { %487 = vadd.xlane.f32.xlu0 %v486_v60 }
  0x3a   : > { %v518_v62 = vadd.f32 %v517_v61, %v516_v58 }
  0x3c   : > { %745 = vlog2.f32 %v518_v62 }
  0x46   : > { %v746_v3 = vpop.eup %745 }
  0x47   : > { %v520_v4 = vmul.f32 0.6931472, %v746_v3 }
  0x49   : > { %v521_v6 = vadd.f32 %v520_v4, %v847_v18 }
  0x4b   : > { %v537_v7 = vsub.f32 %v521_v6, %v536_v5 }
  0x4d   : > { %538 = vst.msk [vmem:[%s431_s10] sm:$0x1] %vm485_vm4, %v537_v7 }
  0xc6   : > { %v488_v9 = vpop.xlane.xlu0 %487 }
  0xc7   : > { %v496_v10 = vadd.f32 %v495_v8, %v488_v9 }
  0xc9   : > { %498 = vst.msk [vmem:[%s434_s30] sm:$0x1] %vm493_vm5, %v496_v10 }
  0xca PF: > { %s18_s26 = sadd.s32 1, %s769_s26   ;;  %s888_s24 = smov %s765_s25 }
  0xcb   : > { %p15_p5 = scmp.ge.s32.totalorder %s18_s26, 4   ;;  %s889_s25 = smov %s891_s27 }
  0xcd   :  { %17 = sbr.rel (!%p15_p5) target bundleno = 2 (0x2), region = 105 }

</bundles_post_ra>
